<compile_context>
chip_gen: v7x
topology: tpu7x:2x2x1
jax: 0.10.0
libtpu: 0.0.40
codegen_flags: <defaults>
</compile_context>

<pallas_src>
import functools

import jax
import jax.numpy as jnp
from jax.experimental import pallas as pl
from jax.experimental.pallas import tpu as pltpu

_LANES = 128
_SUBLANES = 8
_MAX_ROW_TILE = 4096          # (4096, 128) f32 block = 2 MiB per input
_MIN_ROWS_TO_SHARD = 2048     # >= 1 MiB of f32 per input before using 2 TCs


def _cdiv(a, b):
    return -(-a // b)


def _round_up(x, m):
    return ((x + m - 1) // m) * m


def _num_tensorcores():
    """TensorCores per chip: 2 on megacore parts (v4 / v5p / v7x), else 1."""
    try:
        kind = jax.devices()[0].device_kind.lower()
    except Exception:  # pragma: no cover - defensive
        return 1
    if "v7" in kind or "v5p" in kind or "v4" in kind:
        return 2
    return 1


def _plan_tiles(rows, max_row_tile, shards):
    """Choose (row_tile, nblocks, steps) for the streaming reduction.

    Invariants:
      * row_tile % 8 == 0 or row_tile == rows     (BlockSpec tiling rule)
      * nblocks == cdiv(rows, row_tile)           (every block starts in-bounds)
      * shards * steps >= nblocks                 (extra blocks clamped + masked)
    """
    max_row_tile = max(_SUBLANES, (max_row_tile // _SUBLANES) * _SUBLANES)
    if shards == 1 and rows <= max_row_tile:
        return rows, 1, 1
    row_tile = min(max_row_tile, _round_up(_cdiv(rows, shards), _SUBLANES))
    nblocks = _cdiv(rows, row_tile)
    if shards > 1 and nblocks % shards:
        # Re-balance the tile so nblocks divides evenly across shards: removes
        # the clamped (duplicate-DMA, fully-masked) overflow block entirely.
        cand = _round_up(_cdiv(rows, _round_up(nblocks, shards)), _SUBLANES)
        if 0 < cand <= max_row_tile and _cdiv(rows, cand) % shards == 0:
            row_tile = cand
            nblocks = _cdiv(rows, cand)
    steps = _cdiv(nblocks, shards)
    return row_tile, nblocks, steps


def _symlog_sq_kernel(o_ref, t_ref, out_ref, acc_ref, *,
                      rows, row_tile, steps, nblocks, needs_mask):
    c = pl.program_id(0)      # shard axis ("parallel": megacore on v7x)
    i = pl.program_id(1)      # streaming reduction axis ("arbitrary")

    @pl.when(i == 0)
    def _():
        acc_ref[...] = jnp.zeros_like(acc_ref)

    o = o_ref[...].astype(jnp.float32)
    t = t_ref[...].astype(jnp.float32)

    # symlog(t) = copysign(log(1 + |t|), t): log on the EUP, sign via bit ops
    # on the VPU (cheaper than sign()* compare/select/multiply).
    mag = jnp.log(1.0 + jnp.abs(t))
    sign_bits = pltpu.bitcast(t, jnp.uint32) & jnp.uint32(0x80000000)
    t_sym = pltpu.bitcast(pltpu.bitcast(mag, jnp.uint32) | sign_bits,
                          jnp.float32)

    d = o - t_sym
    sq = d * d

    def _accumulate(vals):
        # Fold the (row_tile, 128) block into a single vreg-sized accumulator:
        # ~1 VALU add per data vreg, no per-vreg scratch load/store traffic.
        if row_tile % _SUBLANES == 0:
            acc_ref[...] += jnp.sum(vals.reshape(-1, _SUBLANES, _LANES), axis=0)
        else:  # tiny single-block inputs only (row_tile == rows < a vreg)
            acc_ref[0:1, :] += jnp.sum(vals, axis=0, keepdims=True)

    if needs_mask:
        blk = c * steps + i
        is_edge = blk >= nblocks - 1     # partial tail block or clamped overflow

        @pl.when(jnp.logical_not(is_edge))
        def _():
            _accumulate(sq)              # fast path: no mask work

        @pl.when(is_edge)
        def _():
            row_idx = blk * row_tile + jax.lax.broadcasted_iota(
                jnp.int32, sq.shape, 0)
            _accumulate(jnp.where(row_idx < rows, sq, 0.0))
    else:
        _accumulate(sq)

    @pl.when(i == steps - 1)
    def _():
        out_ref[...] = acc_ref[...].reshape(out_ref.shape)


def _symlog_sq_sum(o2d, t2d, max_row_tile, shards):
    """Sum of (output - symlog(target))^2 over a (rows, 128) lane-aligned slab."""
    rows = o2d.shape[0]
    row_tile, nblocks, steps = _plan_tiles(rows, max_row_tile, shards)
    needs_mask = (nblocks * row_tile != rows) or (shards * steps != nblocks)

    def in_index_map(c, i):
        # Clamp is only a safety net; with an even split it never fires and any
        # clamped block is fully zeroed by the in-kernel mask.
        return (jnp.minimum(c * steps + i, nblocks - 1), 0)

    kernel = functools.partial(
        _symlog_sq_kernel, rows=rows, row_tile=row_tile, steps=steps,
        nblocks=nblocks, needs_mask=needs_mask)

    n_k = rows * _LANES
    cost = pl.CostEstimate(
        flops=7 * n_k, transcendentals=n_k,
        bytes_accessed=(o2d.size * o2d.dtype.itemsize
                        + t2d.size * t2d.dtype.itemsize
                        + shards * _SUBLANES * _LANES * 4))

    partials = pl.pallas_call(
        kernel,
        out_shape=jax.ShapeDtypeStruct((shards, _SUBLANES, _LANES),
                                       jnp.float32),
        grid_spec=pltpu.PrefetchScalarGridSpec(
            num_scalar_prefetch=0,
            grid=(shards, steps),
            in_specs=[
                pl.BlockSpec((row_tile, _LANES), in_index_map),
                pl.BlockSpec((row_tile, _LANES), in_index_map),
            ],
            out_specs=pl.BlockSpec((1, _SUBLANES, _LANES),
                                   lambda c, i: (c, 0, 0)),
            scratch_shapes=[pltpu.VMEM((_SUBLANES, _LANES), jnp.float32)],
        ),
        compiler_params=pltpu.CompilerParams(
            dimension_semantics=("parallel", "arbitrary")),
        cost_estimate=cost,
    )(o2d, t2d)

    # One vreg-sized partial per shard; unused entries are zero, so a flat sum
    # (trivial XLA reduce of shards*1024 elements) gives the total.
    return jnp.sum(partials)


def symlog_loss(output, target, *, max_row_tile=_MAX_ROW_TILE, shards=None):
    """0.5 * mean((output - symlog(target))^2), computed in a Pallas TPU kernel."""
    assert output.shape == target.shape, (output.shape, target.shape)
    n = output.size
    assert n > 0

    flat_o = output.reshape(-1)
    flat_t = target.reshape(-1)
    n_main = (n // _LANES) * _LANES
    rows = n_main // _LANES

    if shards is None:
        shards = _num_tensorcores() if rows >= _MIN_ROWS_TO_SHARD else 1
    shards = max(1, min(int(shards), max(1, rows // _SUBLANES)))

    total = jnp.zeros((), jnp.float32)
    if rows > 0:
        main_o = flat_o if n_main == n else flat_o[:n_main]
        main_t = flat_t if n_main == n else flat_t[:n_main]
        total = total + _symlog_sq_sum(main_o.reshape(rows, _LANES),
                                       main_t.reshape(rows, _LANES),
                                       max_row_tile, shards)
    if n_main != n:
        # < 128-element ragged tail: tiny XLA reduction, avoids copying/padding
        # the full inputs just to make them lane-aligned.
        to = flat_o[n_main:].astype(jnp.float32)
        tt = flat_t[n_main:].astype(jnp.float32)
        tail_sym = jnp.sign(tt) * jnp.log(1.0 + jnp.abs(tt))
        total = total + jnp.sum((to - tail_sym) ** 2)

    return total * jnp.float32(0.5 / n)


def _symlog_loss_ref(output, target):
    t = jnp.sign(target) * jnp.log(1.0 + jnp.abs(target))
    return 0.5 * jnp.mean((output.astype(jnp.float32)
                           - t.astype(jnp.float32)) ** 2)


def _check(shape, key, **kwargs):
    k1, k2 = jax.random.split(key)
    output = jax.random.normal(k1, shape, dtype=jnp.float32)
    target = 3.0 * jax.random.normal(k2, shape, dtype=jnp.float32)
    loss = jax.block_until_ready(symlog_loss(output, target, **kwargs))
    ref = jax.block_until_ready(_symlog_loss_ref(output, target))
    assert jnp.allclose(loss, ref, rtol=3e-5, atol=1e-6), (shape, kwargs, loss, ref)


if __name__ == "__main__":
    key = jax.random.PRNGKey(0)
    ks = jax.random.split(key, 4)

    # Primary NCHW example (single-block fast path).
    _check((2, 4, 16, 16), ks[0])
    # Ragged element count (n % 128 != 0): lane-aligned prefix goes through the
    # kernel, the tiny tail is folded in by the wrapper.
    _check((2, 3, 5, 7), ks[1])
    # Multi-block streaming path with a partial (gated-mask) last block.
    _check((2, 3, 16, 16), ks[2], max_row_tile=8)
    # Two-shard reduction path (one accumulator + partial output per shard).
    _check((4, 4, 32, 32), ks[3], max_row_tile=48, shards=2)

    print("KERNEL_OK")
</pallas_src>

<mosaic_0001>
module attributes {stable_mosaic.version = 11 : i64} {
  func.func @_symlog_sq_kernel(%arg0: i32, %arg1: i32, %arg2: memref<16x128xf32, #tpu.memory_space<vmem>>, %arg3: memref<16x128xf32, #tpu.memory_space<vmem>>, %arg4: memref<1x8x128xf32, #tpu.memory_space<vmem>>, %arg5: memref<8x128xf32, #tpu.memory_space<vmem>>) attributes {dimension_semantics = [#tpu.dimension_semantics<parallel>, #tpu.dimension_semantics<arbitrary>], iteration_bounds = array<i64: 1, 1>, scalar_prefetch = 0 : i64, scratch_operands = 1 : i64, tpu.core_type = #tpu.core_type<tc>, window_params = [{transform_indices = @transform_0, window_bounds = array<i64: 16, 128>}, {transform_indices = @transform_1, window_bounds = array<i64: 16, 128>}, {transform_indices = @transform_2, window_bounds = array<i64: 1, 8, 128>}]} {
    %c0_i32 = arith.constant 0 : i32
    %0 = arith.cmpi eq, %arg1, %c0_i32 : i32
    %1 = arith.extui %0 : i1 to i32
    %c0_i32_0 = arith.constant 0 : i32
    %2 = arith.cmpi ne, %1, %c0_i32_0 : i32
    scf.if %2 {
      %cst_11 = arith.constant 0.000000e+00 : f32
      %25 = vector.broadcast %cst_11 : f32 to vector<8x128xf32>
      %c0_12 = arith.constant 0 : index
      %c0_13 = arith.constant 0 : index
      %26 = vector.load %arg5[%c0_12, %c0_13] : memref<8x128xf32, #tpu.memory_space<vmem>>, vector<8x128xf32>
      tpu.vector_store %arg5[%c0_12, %c0_13], %25 {strides = array<i32>} : memref<8x128xf32, #tpu.memory_space<vmem>>, vector<8x128xf32>,
    } else {
    }
    %c0 = arith.constant 0 : index
    %c0_1 = arith.constant 0 : index
    %3 = vector.load %arg2[%c0, %c0_1] : memref<16x128xf32, #tpu.memory_space<vmem>>, vector<16x128xf32>
    %c0_2 = arith.constant 0 : index
    %c0_3 = arith.constant 0 : index
    %4 = vector.load %arg3[%c0_2, %c0_3] : memref<16x128xf32, #tpu.memory_space<vmem>>, vector<16x128xf32>
    %5 = math.absf %4 : vector<16x128xf32>
    %cst = arith.constant 1.000000e+00 : f32
    %6 = vector.broadcast %cst : f32 to vector<16x128xf32>
    %7 = arith.addf %6, %5 : vector<16x128xf32>
    %8 = math.log %7 : vector<16x128xf32>
    %9 = tpu.bitcast %4 : vector<16x128xf32> -> vector<16x128xi32>
    %c-2147483648_i32 = arith.constant -2147483648 : i32
    %10 = vector.broadcast %c-2147483648_i32 : i32 to vector<16x128xi32>
    %11 = arith.andi %9, %10 : vector<16x128xi32>
    %12 = tpu.bitcast %8 : vector<16x128xf32> -> vector<16x128xi32>
    %13 = arith.ori %12, %11 : vector<16x128xi32>
    %14 = tpu.bitcast %13 : vector<16x128xi32> -> vector<16x128xf32>
    %15 = arith.subf %3, %14 : vector<16x128xf32>
    %16 = arith.mulf %15, %15 : vector<16x128xf32>
    %c0_4 = arith.constant 0 : index
    %c0_5 = arith.constant 0 : index
    %17 = vector.load %arg5[%c0_4, %c0_5] : memref<8x128xf32, #tpu.memory_space<vmem>>, vector<8x128xf32>
    %18 = vector.shape_cast %16 : vector<16x128xf32> to vector<2x8x128xf32>
    %cst_6 = arith.constant dense<0.000000e+00> : vector<8x128xf32>
    %19 = vector.multi_reduction <add>, %18, %cst_6 [0] : vector<2x8x128xf32> to vector<8x128xf32>
    %20 = arith.addf %17, %19 : vector<8x128xf32>
    %c0_7 = arith.constant 0 : index
    %c0_8 = arith.constant 0 : index
    %21 = vector.load %arg5[%c0_7, %c0_8] : memref<8x128xf32, #tpu.memory_space<vmem>>, vector<8x128xf32>
    tpu.vector_store %arg5[%c0_7, %c0_8], %20 {strides = array<i32>} : memref<8x128xf32, #tpu.memory_space<vmem>>, vector<8x128xf32>,
    %c0_i32_9 = arith.constant 0 : i32
    %22 = arith.cmpi eq, %arg1, %c0_i32_9 : i32
    %23 = arith.extui %22 : i1 to i32
    %c0_i32_10 = arith.constant 0 : i32
    %24 = arith.cmpi ne, %23, %c0_i32_10 : i32
    scf.if %24 {
      %c0_11 = arith.constant 0 : index
      %c0_12 = arith.constant 0 : index
      %25 = vector.load %arg5[%c0_11, %c0_12] : memref<8x128xf32, #tpu.memory_space<vmem>>, vector<8x128xf32>
      %26 = vector.shape_cast %25 : vector<8x128xf32> to vector<1x8x128xf32>
      %c0_13 = arith.constant 0 : index
      %c0_14 = arith.constant 0 : index
      %c0_15 = arith.constant 0 : index
      %27 = vector.load %arg4[%c0_13, %c0_14, %c0_15] : memref<1x8x128xf32, #tpu.memory_space<vmem>>, vector<1x8x128xf32>
      tpu.vector_store %arg4[%c0_13, %c0_14, %c0_15], %26 {strides = array<i32>} : memref<1x8x128xf32, #tpu.memory_space<vmem>>, vector<1x8x128xf32>,
    } else {
    }
    return
  }
  func.func @transform_0(%arg0: i32, %arg1: i32) -> (i32, i32) {
    %c1_i32 = arith.constant 1 : i32
    %0 = arith.muli %arg0, %c1_i32 : i32
    %1 = arith.addi %0, %arg1 : i32
    %c0_i32 = arith.constant 0 : i32
    %2 = arith.minsi %1, %c0_i32 : i32
    %c0_i32_0 = arith.constant 0 : i32
    %c0_i32_1 = arith.constant 0 : i32
    return %2, %c0_i32_0 : i32, i32
  }
  func.func @transform_1(%arg0: i32, %arg1: i32) -> (i32, i32) {
    %c1_i32 = arith.constant 1 : i32
    %0 = arith.muli %arg0, %c1_i32 : i32
    %1 = arith.addi %0, %arg1 : i32
    %c0_i32 = arith.constant 0 : i32
    %2 = arith.minsi %1, %c0_i32 : i32
    %c0_i32_0 = arith.constant 0 : i32
    %c0_i32_1 = arith.constant 0 : i32
    return %2, %c0_i32_0 : i32, i32
  }
  func.func @transform_2(%arg0: i32, %arg1: i32) -> (i32, i32, i32) {
    %c0_i32 = arith.constant 0 : i32
    %c0_i32_0 = arith.constant 0 : i32
    %c0_i32_1 = arith.constant 0 : i32
    return %arg0, %c0_i32, %c0_i32_0 : i32, i32, i32
  }
}

</mosaic_0001>

<bundles_post_ra>
// kernel: tpu_custom_call.1
= control target key start
LH: loop header
LB: loop body
LE: loop exit
PB: predicated region body
PF: predicated region fallthrough
CT: control target
= control target key end

     0   :  { %7 = vsyncpa [#allocation4], 0  ;;  %s257_s0 = inlined_call_operand.hbm [shape: f32[16,128], index: 0, kind: input, shape index: {}]   ;;  %s258_s1 = inlined_call_operand.hbm [shape: f32[16,128], index: 1, kind: input, shape index: {}]   ;;  %s259_s2 = inlined_call_operand.hbm [shape: f32[1,8,128], index: 2, kind: output, shape index: {}]  }
   0x1   :  { %8 = vsyncpa [#allocation7], 0 }
   0x2   :  { %9 = vsyncpa [#allocation5], 0  ;;  %s201_s9 = smov [#allocation3]   ;;  %s129_s13 = scalar_lea.hbm %s257_s0, 256 }
   0x3   :  { %s21_s10 = sshll.u32 %s201_s9, 4  ;;  %p130_p0 = scmp.ne.s32.totalorder %s257_s0, %s129_s13  ;;  %s22_s10 = int_to_ptr.vmem [resolvable:$true] %s21_s10 }
   0x4   :  { %p133_p1 = scmp.lt.u32.totalorder %s129_s13, %s257_s0 }
   0x6   :  { %p135_p2 = pnand %p133_p1, %p130_p0 }
   0x8   :  { %138 = shalt.err (!%p135_p2)
}
   0x9   :  { %s139_s18 = scalar_lea.vmem %s22_s10, 256  ;;  %p144_p4 = scmp.lt.s32.totalorder %s22_s10, %s22_s10 }
   0xa   :  { %p140_p3 = scmp.ne.s32.totalorder %s22_s10, %s139_s18  ;;  %p145_p5 = scmp.lt.s32.totalorder %s139_s18, %s139_s18 }
   0xc   :  { %p146_p6 = por %p145_p5, %p144_p4 }
   0xe   :  { %p147_p7 = pnand %p146_p6, %p140_p3 }
  0x10   :  { %150 = shalt.err (!%p147_p7)
}
  0x11   :  { %s202_s19 = smov 128   ;;  %s203_s20 = smov 8  }
  0x12   :  { %27 = dma.hbm_to_vmem [thread:$0]  %s257_s0, 256, %s22_s10, [#allocation4], %s202_s19, %s202_s19, %s203_s20  }
  0x13   :  { %s204_s23 = smov [#allocation6]   ;;  %s151_s27 = scalar_lea.hbm %s258_s1, 256 }
  0x14   :  { %s39_s24 = sshll.u32 %s204_s23, 4  ;;  %p152_p8 = scmp.ne.s32.totalorder %s258_s1, %s151_s27  ;;  %s40_s24 = int_to_ptr.vmem [resolvable:$true] %s39_s24 }
  0x15   :  { %p155_p9 = scmp.lt.u32.totalorder %s151_s27, %s258_s1 }
  0x17   :  { %p157_p10 = pnand %p155_p9, %p152_p8 }
  0x19   :  { %160 = shalt.err (!%p157_p10)
}
  0x1a   :  { %s161_s4 = scalar_lea.vmem %s40_s24, 256  ;;  %p166_p12 = scmp.lt.s32.totalorder %s40_s24, %s40_s24 }
  0x1b   :  { %p162_p11 = scmp.ne.s32.totalorder %s40_s24, %s161_s4  ;;  %p167_p13 = scmp.lt.s32.totalorder %s161_s4, %s161_s4 }
  0x1d   :  { %p168_p0 = por %p167_p13, %p166_p12 }
  0x1f   :  { %p169_p1 = pnand %p168_p0, %p162_p11 }
  0x21   :  { %172 = shalt.err (!%p169_p1)
}
  0x22   :  { %45 = dma.hbm_to_vmem [thread:$0]  %s258_s1, 256, %s40_s24, [#allocation7], %s202_s19, %s202_s19, %s203_s20  }
  0x23   :  { %195 = dma.done.wait [#allocation4], 256  }
  0x24   :  { %196 = vsyncadd [#allocation4], 4294967040 }
  0x25   :  { %197 = dma.done.wait [#allocation7], 256  }
  0x26   :  { %198 = vsyncadd [#allocation7], 4294967040  ;;  %v67_v0 = vld [vmem:[#allocation6] sm:$0xff]  ;;  %v68_v1 = vld [vmem:[#allocation6 + $0x8] sm:$0xff]  ;;  %s205_s1 = smov [#allocation8]  }
  0x27   :  { %v69_v2 = vand.u32 2147483647, %v67_v0  ;;  %v70_v3 = vand.u32 2147483647, %v68_v1  ;;  %v79_v6 = vand.u32 2147483648, %v67_v0  ;;  %v80_v8 = vand.u32 2147483648, %v68_v1 }
  0x28   :  { %v65_v11 = vld [vmem:[#allocation3] sm:$0xff]  ;;  %v66_v13 = vld [vmem:[#allocation3 + $0x8] sm:$0xff]  ;;  %s106_s6 = sshll.u32 %s205_s1, 4  ;;  %s107_s6 = int_to_ptr.vmem [resolvable:$true] %s106_s6 }
  0x29   :  { %v71_v4 = vadd.f32 1.0, %v69_v2  ;;  %v72_v5 = vadd.f32 1.0, %v70_v3  ;;  %s173_s7 = scalar_lea.vmem %s107_s6, 128  ;;  %p178_p3 = scmp.lt.s32.totalorder %s107_s6, %s107_s6 }
  0x2a   :  { %p174_p2 = scmp.ne.s32.totalorder %s107_s6, %s173_s7  ;;  %p179_p4 = scmp.lt.s32.totalorder %s173_s7, %s173_s7 }
  0x2b   :  { %125 = vlog2.f32 %v71_v4 }
  0x2c   :  { %127 = vlog2.f32 %v72_v5  ;;  %p180_p5 = por %p179_p4, %p178_p3 }
  0x2e   :  { %p181_p6 = pnand %p180_p5, %p174_p2 }
  0x35   :  { %v126_v7 = vpop.eup %125 }
  0x36   :  { %v128_v9 = vpop.eup %127  ;;  %v74_v10 = vmul.f32 0.6931472, %v126_v7 }
  0x37   :  { %v76_v12 = vmul.f32 0.6931472, %v128_v9 }
  0x38   :  { %v83_v14 = vor.u32 %v79_v6, %v74_v10 }
  0x39   :  { %v84_v15 = vor.u32 %v80_v8, %v76_v12 }
  0x3a   :  { %v87_v16 = vsub.f32 %v65_v11, %v83_v14 }
  0x3b   :  { %v88_v17 = vsub.f32 %v66_v13, %v84_v15 }
  0x3c   :  { %v89_v18 = vmul.f32 %v87_v16, %v87_v16 }
  0x3d   :  { %v90_v19 = vmul.f32 %v88_v17, %v88_v17 }
  0x3f   :  { %v92_v20 = vadd.f32 %v90_v19, %v89_v18 }
  0x41   :  { %99 = vst [vmem:[#allocation8] sm:$0xff] %v92_v20 }
  0x42   :  { %184 = shalt.err (!%p181_p6)
}
  0x43   :  { %s185_s10 = scalar_lea.hbm %s259_s2, 128 }
  0x44   :  { %p186_p7 = scmp.ne.s32.totalorder %s259_s2, %s185_s10  ;;  %p189_p8 = scmp.lt.u32.totalorder %s185_s10, %s259_s2 }
  0x46   :  { %p191_p9 = pnand %p189_p8, %p186_p7 }
  0x48   :  { %194 = shalt.err (!%p191_p9)
}
  0x49   :  { %109 = dma.vmem_to_hbm [thread:$0]  %s107_s6, 128, %s259_s2, [#allocation5]  }
  0x4a   :  { %199 = dma.done.wait [#allocation5], 128  }
  0x4b   :  { %200 = vsyncadd [#allocation5], 4294967168 }
  0x4c   :  { %113 = vsyncpa [#allocation4], 1 }
  0x4d   :  { %114 = vsyncpa [#allocation7], 1 }
  0x4e   :  { %115 = vsyncpa [#allocation5], 1 }

</bundles_post_ra>
